<compile_context>
chip_gen: v5e
topology: v5e:2x2
jax: 0.10.0
libtpu: 0.0.40
codegen_flags: <defaults>
</compile_context>

<pallas_src>
import jax
import jax.numpy as jnp
import numpy as np
from jax.experimental import pallas as pl
from jax.experimental.pallas import tpu as pltpu

_GR, _GG, _GB = 0.2989, 0.587, 0.114  # torchvision rgb_to_grayscale weights
_LANES = 128
_MAX_TILE_ROWS = 512  # 512*128 f32 = 256 KiB per channel per tile


def _color_jitter_kernel(params_ref, cmean_ref, x_ref, o_ref):
    # params_ref : SMEM (5,)  f32 = [brightness, contrast, saturation, 1-saturation, 6*hue]
    # cmean_ref  : SMEM (N,)  f32 = (1-contrast) * mean(gray(brightness(img_n)))  (hoisted)
    # x_ref/o_ref: VMEM (3, 1, tile_rows, 128)
    n = pl.program_id(0)
    bf = params_ref[0]
    cf = params_ref[1]
    sf = params_ref[2]
    omsf = params_ref[3]
    hf6 = params_ref[4]
    cm = cmean_ref[n]

    r = x_ref[0, 0]  # (tile_rows, 128)
    g = x_ref[1, 0]
    b = x_ref[2, 0]

    # TODO(synk): torchvision applies the 4 adjustments in a *random* order per call;
    # here the order is fixed to brightness -> contrast -> saturation -> hue.

    # brightness: blend(img, 0, bf) then clamp
    r = jnp.clip(r * bf, 0.0, 1.0)
    g = jnp.clip(g * bf, 0.0, 1.0)
    b = jnp.clip(b * bf, 0.0, 1.0)

    # contrast: blend(img, mean(gray(img)), cf); (1-cf)*mean precomputed per image (SMEM)
    r = jnp.clip(cf * r + cm, 0.0, 1.0)
    g = jnp.clip(cf * g + cm, 0.0, 1.0)
    b = jnp.clip(cf * b + cm, 0.0, 1.0)

    # saturation: blend(img, gray(img), sf)   (gray = 3 FMAs on the VPU, never the MXU)
    gray = omsf * (_GR * r + _GG * g + _GB * b)
    r = jnp.clip(sf * r + gray, 0.0, 1.0)
    g = jnp.clip(sf * g + gray, 0.0, 1.0)
    b = jnp.clip(sf * b + gray, 0.0, 1.0)

    # hue: rgb -> hsv, shift h, hsv -> rgb.  Uses v*s == chroma (v = maxc) and the
    # continuous branchless hsv->rgb form — identical math to torchvision's sector
    # formula, but with no floor/sector selects and no extra divides.
    maxc = jnp.maximum(jnp.maximum(r, g), b)
    minc = jnp.minimum(jnp.minimum(r, g), b)
    chroma = maxc - minc
    inv_c = 1.0 / jnp.where(maxc == minc, jnp.ones_like(chroma), chroma)
    rc = (maxc - r) * inv_c
    gc = (maxc - g) * inv_c
    bc = (maxc - b) * inv_c
    hr = jnp.where(maxc == r, bc - gc, 0.0)
    hg = jnp.where((maxc == g) & (maxc != r), 2.0 + rc - bc, 0.0)
    hb = jnp.where((maxc != g) & (maxc != r), 4.0 + gc - rc, 0.0)
    h6 = hr + hg + hb + hf6  # 6*hue (torchvision's "+1 mod 1" wrap is absorbed by mod 6)

    def hsv_chan(shift):
        k = jnp.mod(shift + h6, 6.0)
        w = jnp.clip(jnp.minimum(k, 4.0 - k), 0.0, 1.0)
        return maxc - chroma * w

    # final clamp(0, 1) as in the module's forward (.clamp_(0, 1))
    o_ref[0, 0] = jnp.clip(hsv_chan(5.0), 0.0, 1.0)
    o_ref[1, 0] = jnp.clip(hsv_chan(3.0), 0.0, 1.0)
    o_ref[2, 0] = jnp.clip(hsv_chan(1.0), 0.0, 1.0)


def _contrast_mean_term(x, bf, cf):
    """(1-cf) * per-image mean of grayscale(brightness-adjusted image).

    x: (3, N, H, W).  Returns (N,) f32.  Tiny plain-JAX prepass, hoisted out of the
    Pallas kernel so the kernel body is purely elementwise and spatially tileable.
    """
    r = jnp.clip(x[0] * bf, 0.0, 1.0)
    g = jnp.clip(x[1] * bf, 0.0, 1.0)
    b = jnp.clip(x[2] * bf, 0.0, 1.0)
    gray = _GR * r + _GG * g + _GB * b  # (N, H, W)
    return (1.0 - cf) * jnp.mean(gray, axis=(1, 2))


def color_jitter(x, params):
    """x: (C=3, N, H, W) float32 in [0, 1]; params: (4,) f32 = [brightness, contrast, saturation, hue]."""
    C, N, H, W = x.shape
    assert C == 3, "hue adjustment requires 3 channels"
    bf, cf, sf, hf = params[0], params[1], params[2], params[3]

    cmean = _contrast_mean_term(x, bf, cf).astype(jnp.float32)             # (N,)
    kparams = jnp.stack([bf, cf, sf, 1.0 - sf, 6.0 * hf]).astype(jnp.float32)

    # Lane-dense layout in the module's native (3, N, H, W) order: flatten spatial dims
    # onto (rows, 128) tiles.  Reshape of contiguous trailing dims is free (no transpose).
    P = H * W
    rows = pl.cdiv(P, _LANES)
    tile_rows = rows if rows <= _MAX_TILE_ROWS else _MAX_TILE_ROWS
    rows_p = pl.cdiv(rows, tile_rows) * tile_rows
    Pp = rows_p * _LANES

    xf = x.reshape(C, N, P)
    if Pp != P:  # pad only when H*W is not already a multiple of the tile
        xf = jnp.pad(xf, ((0, 0), (0, 0), (0, Pp - P)))
    xf = xf.reshape(C, N, rows_p, _LANES)

    blk = (C, 1, tile_rows, _LANES)
    idx = lambda n, s: (0, n, s, 0)

    out = pl.pallas_call(
        _color_jitter_kernel,
        out_shape=jax.ShapeDtypeStruct((C, N, rows_p, _LANES), jnp.float32),
        grid=(N, rows_p // tile_rows),
        in_specs=[
            pl.BlockSpec(memory_space=pltpu.MemorySpace.SMEM),  # jitter factors
            pl.BlockSpec(memory_space=pltpu.MemorySpace.SMEM),  # per-image contrast mean
            pl.BlockSpec(blk, idx),
        ],
        out_specs=pl.BlockSpec(blk, idx),
        compiler_params=pltpu.CompilerParams(
            dimension_semantics=("parallel", "parallel"),
            vmem_limit_bytes=32 * 1024 * 1024,
        ),
    )(kparams, cmean, xf)

    out = out.reshape(C, N, Pp)
    if Pp != P:
        out = out[:, :, :P]
    return out.reshape(C, N, H, W)


def color_jitter_ref(x, params):
    """Pure-JAX reference of the same fixed-order jitter (for correctness check)."""
    bf, cf, sf, hf = params[0], params[1], params[2], params[3]
    clip = lambda a: jnp.clip(a, 0.0, 1.0)
    cm = _contrast_mean_term(x, bf, cf)[:, None, None]  # (N, 1, 1)

    r, g, b = clip(x[0] * bf), clip(x[1] * bf), clip(x[2] * bf)
    r, g, b = clip(cf * r + cm), clip(cf * g + cm), clip(cf * b + cm)
    gray = (1.0 - sf) * (_GR * r + _GG * g + _GB * b)
    r, g, b = clip(sf * r + gray), clip(sf * g + gray), clip(sf * b + gray)

    maxc = jnp.maximum(jnp.maximum(r, g), b)
    minc = jnp.minimum(jnp.minimum(r, g), b)
    chroma = maxc - minc
    inv_c = 1.0 / jnp.where(maxc == minc, jnp.ones_like(chroma), chroma)
    rc = (maxc - r) * inv_c
    gc = (maxc - g) * inv_c
    bc = (maxc - b) * inv_c
    hr = jnp.where(maxc == r, bc - gc, 0.0)
    hg = jnp.where((maxc == g) & (maxc != r), 2.0 + rc - bc, 0.0)
    hb = jnp.where((maxc != g) & (maxc != r), 4.0 + gc - rc, 0.0)
    h6 = hr + hg + hb + 6.0 * hf

    def chan(shift):
        k = jnp.mod(shift + h6, 6.0)
        w = jnp.clip(jnp.minimum(k, 4.0 - k), 0.0, 1.0)
        return clip(maxc - chroma * w)

    return jnp.stack([chan(5.0), chan(3.0), chan(1.0)], axis=0)


if __name__ == "__main__":
    key = jax.random.PRNGKey(0)
    kb, kc, ks, kh, kx = jax.random.split(key, 5)
    # torchvision ColorJitter(0.1, 0.1, 0.1, 0.1) samples:
    #   brightness, contrast, saturation ~ U[0.9, 1.1]; hue ~ U[-0.1, 0.1]
    brightness = jax.random.uniform(kb, (), minval=0.9, maxval=1.1)
    contrast = jax.random.uniform(kc, (), minval=0.9, maxval=1.1)
    saturation = jax.random.uniform(ks, (), minval=0.9, maxval=1.1)
    hue = jax.random.uniform(kh, (), minval=-0.1, maxval=0.1)
    params = jnp.stack([brightness, contrast, saturation, hue]).astype(jnp.float32)

    # module input layout: (C=3, N, H, W), values in [0, 1]
    x = jax.random.uniform(kx, (3, 2, 16, 16), dtype=jnp.float32)

    out = jax.block_until_ready(color_jitter(x, params))
    ref = jax.block_until_ready(color_jitter_ref(x, params))

    assert out.shape == x.shape and out.dtype == jnp.float32
    np.testing.assert_allclose(np.asarray(out), np.asarray(ref), atol=1e-5, rtol=1e-5)
    print("KERNEL_OK")
</pallas_src>

<mosaic_0001>
module attributes {stable_mosaic.version = 11 : i64} {
  func.func @_color_jitter_kernel(%arg0: i32, %arg1: i32, %arg2: memref<5xf32, #tpu.memory_space<smem>>, %arg3: memref<2xf32, #tpu.memory_space<smem>>, %arg4: memref<3x1x2x128xf32, #tpu.memory_space<vmem>>, %arg5: memref<3x1x2x128xf32, #tpu.memory_space<vmem>>) attributes {dimension_semantics = [#tpu.dimension_semantics<parallel>, #tpu.dimension_semantics<parallel>], iteration_bounds = array<i64: 2, 1>, scalar_prefetch = 0 : i64, scratch_operands = 0 : i64, tpu.core_type = #tpu.core_type<tc>, window_params = [{transform_indices = @transform_0, window_bounds = array<i64: 5>}, {transform_indices = @transform_1, window_bounds = array<i64: 2>}, {transform_indices = @transform_2, window_bounds = array<i64: 3, 1, 2, 128>}, {transform_indices = @transform_3, window_bounds = array<i64: 3, 1, 2, 128>}]} {
    %c0 = arith.constant 0 : index
    %0 = memref.load %arg2[%c0] : memref<5xf32, #tpu.memory_space<smem>>
    %c1 = arith.constant 1 : index
    %1 = memref.load %arg2[%c1] : memref<5xf32, #tpu.memory_space<smem>>
    %c2 = arith.constant 2 : index
    %2 = memref.load %arg2[%c2] : memref<5xf32, #tpu.memory_space<smem>>
    %c3 = arith.constant 3 : index
    %3 = memref.load %arg2[%c3] : memref<5xf32, #tpu.memory_space<smem>>
    %c4 = arith.constant 4 : index
    %4 = memref.load %arg2[%c4] : memref<5xf32, #tpu.memory_space<smem>>
    %5 = arith.index_cast %arg0 : i32 to index
    %6 = memref.load %arg3[%5] : memref<2xf32, #tpu.memory_space<smem>>
    %c0_0 = arith.constant 0 : index
    %c0_1 = arith.constant 0 : index
    %c0_2 = arith.constant 0 : index
    %c0_3 = arith.constant 0 : index
    %7 = vector.load %arg4[%c0_0, %c0_1, %c0_2, %c0_3] : memref<3x1x2x128xf32, #tpu.memory_space<vmem>>, vector<1x1x2x128xf32>
    %8 = vector.shape_cast %7 : vector<1x1x2x128xf32> to vector<2x128xf32>
    %c1_4 = arith.constant 1 : index
    %c0_5 = arith.constant 0 : index
    %c0_6 = arith.constant 0 : index
    %c0_7 = arith.constant 0 : index
    %9 = vector.load %arg4[%c1_4, %c0_5, %c0_6, %c0_7] : memref<3x1x2x128xf32, #tpu.memory_space<vmem>>, vector<1x1x2x128xf32>
    %10 = vector.shape_cast %9 : vector<1x1x2x128xf32> to vector<2x128xf32>
    %c2_8 = arith.constant 2 : index
    %c0_9 = arith.constant 0 : index
    %c0_10 = arith.constant 0 : index
    %c0_11 = arith.constant 0 : index
    %11 = vector.load %arg4[%c2_8, %c0_9, %c0_10, %c0_11] : memref<3x1x2x128xf32, #tpu.memory_space<vmem>>, vector<1x1x2x128xf32>
    %12 = vector.shape_cast %11 : vector<1x1x2x128xf32> to vector<2x128xf32>
    %13 = vector.broadcast %0 : f32 to vector<2x128xf32>
    %14 = arith.mulf %8, %13 : vector<2x128xf32>
    %cst = arith.constant 0.000000e+00 : f32
    %cst_12 = arith.constant 1.000000e+00 : f32
    %15 = vector.broadcast %cst : f32 to vector<2x128xf32>
    %16 = arith.maximumf %15, %14 : vector<2x128xf32>
    %17 = vector.broadcast %cst_12 : f32 to vector<2x128xf32>
    %18 = arith.minimumf %17, %16 : vector<2x128xf32>
    %19 = vector.broadcast %0 : f32 to vector<2x128xf32>
    %20 = arith.mulf %10, %19 : vector<2x128xf32>
    %cst_13 = arith.constant 0.000000e+00 : f32
    %cst_14 = arith.constant 1.000000e+00 : f32
    %21 = vector.broadcast %cst_13 : f32 to vector<2x128xf32>
    %22 = arith.maximumf %21, %20 : vector<2x128xf32>
    %23 = vector.broadcast %cst_14 : f32 to vector<2x128xf32>
    %24 = arith.minimumf %23, %22 : vector<2x128xf32>
    %25 = vector.broadcast %0 : f32 to vector<2x128xf32>
    %26 = arith.mulf %12, %25 : vector<2x128xf32>
    %cst_15 = arith.constant 0.000000e+00 : f32
    %cst_16 = arith.constant 1.000000e+00 : f32
    %27 = vector.broadcast %cst_15 : f32 to vector<2x128xf32>
    %28 = arith.maximumf %27, %26 : vector<2x128xf32>
    %29 = vector.broadcast %cst_16 : f32 to vector<2x128xf32>
    %30 = arith.minimumf %29, %28 : vector<2x128xf32>
    %31 = vector.broadcast %1 : f32 to vector<2x128xf32>
    %32 = arith.mulf %31, %18 : vector<2x128xf32>
    %33 = vector.broadcast %6 : f32 to vector<2x128xf32>
    %34 = arith.addf %32, %33 : vector<2x128xf32>
    %cst_17 = arith.constant 0.000000e+00 : f32
    %cst_18 = arith.constant 1.000000e+00 : f32
    %35 = vector.broadcast %cst_17 : f32 to vector<2x128xf32>
    %36 = arith.maximumf %35, %34 : vector<2x128xf32>
    %37 = vector.broadcast %cst_18 : f32 to vector<2x128xf32>
    %38 = arith.minimumf %37, %36 : vector<2x128xf32>
    %39 = vector.broadcast %1 : f32 to vector<2x128xf32>
    %40 = arith.mulf %39, %24 : vector<2x128xf32>
    %41 = vector.broadcast %6 : f32 to vector<2x128xf32>
    %42 = arith.addf %40, %41 : vector<2x128xf32>
    %cst_19 = arith.constant 0.000000e+00 : f32
    %cst_20 = arith.constant 1.000000e+00 : f32
    %43 = vector.broadcast %cst_19 : f32 to vector<2x128xf32>
    %44 = arith.maximumf %43, %42 : vector<2x128xf32>
    %45 = vector.broadcast %cst_20 : f32 to vector<2x128xf32>
    %46 = arith.minimumf %45, %44 : vector<2x128xf32>
    %47 = vector.broadcast %1 : f32 to vector<2x128xf32>
    %48 = arith.mulf %47, %30 : vector<2x128xf32>
    %49 = vector.broadcast %6 : f32 to vector<2x128xf32>
    %50 = arith.addf %48, %49 : vector<2x128xf32>
    %cst_21 = arith.constant 0.000000e+00 : f32
    %cst_22 = arith.constant 1.000000e+00 : f32
    %51 = vector.broadcast %cst_21 : f32 to vector<2x128xf32>
    %52 = arith.maximumf %51, %50 : vector<2x128xf32>
    %53 = vector.broadcast %cst_22 : f32 to vector<2x128xf32>
    %54 = arith.minimumf %53, %52 : vector<2x128xf32>
    %cst_23 = arith.constant 2.989000e-01 : f32
    %55 = vector.broadcast %cst_23 : f32 to vector<2x128xf32>
    %56 = arith.mulf %55, %38 : vector<2x128xf32>
    %cst_24 = arith.constant 5.870000e-01 : f32
    %57 = vector.broadcast %cst_24 : f32 to vector<2x128xf32>
    %58 = arith.mulf %57, %46 : vector<2x128xf32>
    %59 = arith.addf %56, %58 : vector<2x128xf32>
    %cst_25 = arith.constant 1.140000e-01 : f32
    %60 = vector.broadcast %cst_25 : f32 to vector<2x128xf32>
    %61 = arith.mulf %60, %54 : vector<2x128xf32>
    %62 = arith.addf %59, %61 : vector<2x128xf32>
    %63 = vector.broadcast %3 : f32 to vector<2x128xf32>
    %64 = arith.mulf %63, %62 : vector<2x128xf32>
    %65 = vector.broadcast %2 : f32 to vector<2x128xf32>
    %66 = arith.mulf %65, %38 : vector<2x128xf32>
    %67 = arith.addf %66, %64 : vector<2x128xf32>
    %cst_26 = arith.constant 0.000000e+00 : f32
    %cst_27 = arith.constant 1.000000e+00 : f32
    %68 = vector.broadcast %cst_26 : f32 to vector<2x128xf32>
    %69 = arith.maximumf %68, %67 : vector<2x128xf32>
    %70 = vector.broadcast %cst_27 : f32 to vector<2x128xf32>
    %71 = arith.minimumf %70, %69 : vector<2x128xf32>
    %72 = vector.broadcast %2 : f32 to vector<2x128xf32>
    %73 = arith.mulf %72, %46 : vector<2x128xf32>
    %74 = arith.addf %73, %64 : vector<2x128xf32>
    %cst_28 = arith.constant 0.000000e+00 : f32
    %cst_29 = arith.constant 1.000000e+00 : f32
    %75 = vector.broadcast %cst_28 : f32 to vector<2x128xf32>
    %76 = arith.maximumf %75, %74 : vector<2x128xf32>
    %77 = vector.broadcast %cst_29 : f32 to vector<2x128xf32>
    %78 = arith.minimumf %77, %76 : vector<2x128xf32>
    %79 = vector.broadcast %2 : f32 to vector<2x128xf32>
    %80 = arith.mulf %79, %54 : vector<2x128xf32>
    %81 = arith.addf %80, %64 : vector<2x128xf32>
    %cst_30 = arith.constant 0.000000e+00 : f32
    %cst_31 = arith.constant 1.000000e+00 : f32
    %82 = vector.broadcast %cst_30 : f32 to vector<2x128xf32>
    %83 = arith.maximumf %82, %81 : vector<2x128xf32>
    %84 = vector.broadcast %cst_31 : f32 to vector<2x128xf32>
    %85 = arith.minimumf %84, %83 : vector<2x128xf32>
    %86 = arith.maximumf %71, %78 : vector<2x128xf32>
    %87 = arith.maximumf %86, %85 : vector<2x128xf32>
    %88 = arith.minimumf %71, %78 : vector<2x128xf32>
    %89 = arith.minimumf %88, %85 : vector<2x128xf32>
    %90 = arith.subf %87, %89 : vector<2x128xf32>
    %91 = arith.cmpf oeq, %87, %89 : vector<2x128xf32>
    %cst_32 = arith.constant 1.000000e+00 : f32
    %92 = vector.broadcast %cst_32 : f32 to vector<2x128xf32>
    %93 = arith.select %91, %92, %90 : vector<2x128xi1>, vector<2x128xf32>
    %cst_33 = arith.constant 1.000000e+00 : f32
    %94 = vector.broadcast %cst_33 : f32 to vector<2x128xf32>
    %95 = arith.divf %94, %93 : vector<2x128xf32>
    %96 = arith.subf %87, %71 : vector<2x128xf32>
    %97 = arith.mulf %96, %95 : vector<2x128xf32>
    %98 = arith.subf %87, %78 : vector<2x128xf32>
    %99 = arith.mulf %98, %95 : vector<2x128xf32>
    %100 = arith.subf %87, %85 : vector<2x128xf32>
    %101 = arith.mulf %100, %95 : vector<2x128xf32>
    %102 = arith.cmpf oeq, %87, %71 : vector<2x128xf32>
    %103 = arith.subf %101, %99 : vector<2x128xf32>
    %cst_34 = arith.constant 0.000000e+00 : f32
    %104 = vector.broadcast %cst_34 : f32 to vector<2x128xf32>
    %105 = arith.select %102, %103, %104 : vector<2x128xi1>, vector<2x128xf32>
    %106 = arith.cmpf oeq, %87, %78 : vector<2x128xf32>
    %107 = arith.cmpf one, %87, %71 : vector<2x128xf32>
    %108 = arith.andi %106, %107 : vector<2x128xi1>
    %cst_35 = arith.constant 2.000000e+00 : f32
    %109 = vector.broadcast %cst_35 : f32 to vector<2x128xf32>
    %110 = arith.addf %109, %97 : vector<2x128xf32>
    %111 = arith.subf %110, %101 : vector<2x128xf32>
    %cst_36 = arith.constant 0.000000e+00 : f32
    %112 = vector.broadcast %cst_36 : f32 to vector<2x128xf32>
    %113 = arith.select %108, %111, %112 : vector<2x128xi1>, vector<2x128xf32>
    %114 = arith.cmpf one, %87, %78 : vector<2x128xf32>
    %115 = arith.cmpf one, %87, %71 : vector<2x128xf32>
    %116 = arith.andi %114, %115 : vector<2x128xi1>
    %cst_37 = arith.constant 4.000000e+00 : f32
    %117 = vector.broadcast %cst_37 : f32 to vector<2x128xf32>
    %118 = arith.addf %117, %99 : vector<2x128xf32>
    %119 = arith.subf %118, %97 : vector<2x128xf32>
    %cst_38 = arith.constant 0.000000e+00 : f32
    %120 = vector.broadcast %cst_38 : f32 to vector<2x128xf32>
    %121 = arith.select %116, %119, %120 : vector<2x128xi1>, vector<2x128xf32>
    %122 = arith.addf %105, %113 : vector<2x128xf32>
    %123 = arith.addf %122, %121 : vector<2x128xf32>
    %124 = vector.broadcast %4 : f32 to vector<2x128xf32>
    %125 = arith.addf %123, %124 : vector<2x128xf32>
    %cst_39 = arith.constant 5.000000e+00 : f32
    %126 = vector.broadcast %cst_39 : f32 to vector<2x128xf32>
    %127 = arith.addf %126, %125 : vector<2x128xf32>
    %cst_40 = arith.constant 6.000000e+00 : f32
    %128 = vector.broadcast %cst_40 : f32 to vector<2x128xf32>
    %129 = arith.remf %127, %128 : vector<2x128xf32>
    %cst_41 = arith.constant 0.000000e+00 : f32
    %130 = vector.broadcast %cst_41 : f32 to vector<2x128xf32>
    %131 = arith.cmpf one, %129, %130 : vector<2x128xf32>
    %cst_42 = arith.constant 0.000000e+00 : f32
    %132 = vector.broadcast %cst_42 : f32 to vector<2x128xf32>
    %133 = arith.cmpf olt, %129, %132 : vector<2x128xf32>
    %cst_43 = arith.constant 0.000000e+00 : f32
    %134 = arith.cmpf olt, %cst_40, %cst_43 : f32
    %135 = vector.broadcast %134 : i1 to vector<2x128xi1>
    %136 = vector.broadcast %135 : vector<2x128xi1> to vector<2x128xi1>
    %137 = arith.xori %133, %136 : vector<2x128xi1>
    %138 = arith.andi %137, %131 : vector<2x128xi1>
    %139 = vector.broadcast %cst_40 : f32 to vector<2x128xf32>
    %140 = arith.addf %129, %139 : vector<2x128xf32>
    %141 = arith.select %138, %140, %129 : vector<2x128xi1>, vector<2x128xf32>
    %cst_44 = arith.constant 4.000000e+00 : f32
    %142 = vector.broadcast %cst_44 : f32 to vector<2x128xf32>
    %143 = arith.subf %142, %141 : vector<2x128xf32>
    %144 = arith.minimumf %141, %143 : vector<2x128xf32>
    %cst_45 = arith.constant 0.000000e+00 : f32
    %cst_46 = arith.constant 1.000000e+00 : f32
    %145 = vector.broadcast %cst_45 : f32 to vector<2x128xf32>
    %146 = arith.maximumf %145, %144 : vector<2x128xf32>
    %147 = vector.broadcast %cst_46 : f32 to vector<2x128xf32>
    %148 = arith.minimumf %147, %146 : vector<2x128xf32>
    %149 = arith.mulf %90, %148 : vector<2x128xf32>
    %150 = arith.subf %87, %149 : vector<2x128xf32>
    %cst_47 = arith.constant 0.000000e+00 : f32
    %cst_48 = arith.constant 1.000000e+00 : f32
    %151 = vector.broadcast %cst_47 : f32 to vector<2x128xf32>
    %152 = arith.maximumf %151, %150 : vector<2x128xf32>
    %153 = vector.broadcast %cst_48 : f32 to vector<2x128xf32>
    %154 = arith.minimumf %153, %152 : vector<2x128xf32>
    %c0_49 = arith.constant 0 : index
    %c0_50 = arith.constant 0 : index
    %c0_51 = arith.constant 0 : index
    %c0_52 = arith.constant 0 : index
    %155 = vector.load %arg5[%c0_49, %c0_50, %c0_51, %c0_52] : memref<3x1x2x128xf32, #tpu.memory_space<vmem>>, vector<1x1x2x128xf32>
    %156 = vector.shape_cast %155 : vector<1x1x2x128xf32> to vector<2x128xf32>
    %157 = vector.shape_cast %154 : vector<2x128xf32> to vector<1x1x2x128xf32>
    tpu.vector_store %arg5[%c0_49, %c0_50, %c0_51, %c0_52], %157 {strides = array<i32>} : memref<3x1x2x128xf32, #tpu.memory_space<vmem>>, vector<1x1x2x128xf32>,
    %cst_53 = arith.constant 3.000000e+00 : f32
    %158 = vector.broadcast %cst_53 : f32 to vector<2x128xf32>
    %159 = arith.addf %158, %125 : vector<2x128xf32>
    %cst_54 = arith.constant 6.000000e+00 : f32
    %160 = vector.broadcast %cst_54 : f32 to vector<2x128xf32>
    %161 = arith.remf %159, %160 : vector<2x128xf32>
    %cst_55 = arith.constant 0.000000e+00 : f32
    %162 = vector.broadcast %cst_55 : f32 to vector<2x128xf32>
    %163 = arith.cmpf one, %161, %162 : vector<2x128xf32>
    %cst_56 = arith.constant 0.000000e+00 : f32
    %164 = vector.broadcast %cst_56 : f32 to vector<2x128xf32>
    %165 = arith.cmpf olt, %161, %164 : vector<2x128xf32>
    %cst_57 = arith.constant 0.000000e+00 : f32
    %166 = arith.cmpf olt, %cst_54, %cst_57 : f32
    %167 = vector.broadcast %166 : i1 to vector<2x128xi1>
    %168 = vector.broadcast %167 : vector<2x128xi1> to vector<2x128xi1>
    %169 = arith.xori %165, %168 : vector<2x128xi1>
    %170 = arith.andi %169, %163 : vector<2x128xi1>
    %171 = vector.broadcast %cst_54 : f32 to vector<2x128xf32>
    %172 = arith.addf %161, %171 : vector<2x128xf32>
    %173 = arith.select %170, %172, %161 : vector<2x128xi1>, vector<2x128xf32>
    %cst_58 = arith.constant 4.000000e+00 : f32
    %174 = vector.broadcast %cst_58 : f32 to vector<2x128xf32>
    %175 = arith.subf %174, %173 : vector<2x128xf32>
    %176 = arith.minimumf %173, %175 : vector<2x128xf32>
    %cst_59 = arith.constant 0.000000e+00 : f32
    %cst_60 = arith.constant 1.000000e+00 : f32
    %177 = vector.broadcast %cst_59 : f32 to vector<2x128xf32>
    %178 = arith.maximumf %177, %176 : vector<2x128xf32>
    %179 = vector.broadcast %cst_60 : f32 to vector<2x128xf32>
    %180 = arith.minimumf %179, %178 : vector<2x128xf32>
    %181 = arith.mulf %90, %180 : vector<2x128xf32>
    %182 = arith.subf %87, %181 : vector<2x128xf32>
    %cst_61 = arith.constant 0.000000e+00 : f32
    %cst_62 = arith.constant 1.000000e+00 : f32
    %183 = vector.broadcast %cst_61 : f32 to vector<2x128xf32>
    %184 = arith.maximumf %183, %182 : vector<2x128xf32>
    %185 = vector.broadcast %cst_62 : f32 to vector<2x128xf32>
    %186 = arith.minimumf %185, %184 : vector<2x128xf32>
    %c1_63 = arith.constant 1 : index
    %c0_64 = arith.constant 0 : index
    %c0_65 = arith.constant 0 : index
    %c0_66 = arith.constant 0 : index
    %187 = vector.load %arg5[%c1_63, %c0_64, %c0_65, %c0_66] : memref<3x1x2x128xf32, #tpu.memory_space<vmem>>, vector<1x1x2x128xf32>
    %188 = vector.shape_cast %187 : vector<1x1x2x128xf32> to vector<2x128xf32>
    %189 = vector.shape_cast %186 : vector<2x128xf32> to vector<1x1x2x128xf32>
    tpu.vector_store %arg5[%c1_63, %c0_64, %c0_65, %c0_66], %189 {strides = array<i32>} : memref<3x1x2x128xf32, #tpu.memory_space<vmem>>, vector<1x1x2x128xf32>,
    %cst_67 = arith.constant 1.000000e+00 : f32
    %190 = vector.broadcast %cst_67 : f32 to vector<2x128xf32>
    %191 = arith.addf %190, %125 : vector<2x128xf32>
    %cst_68 = arith.constant 6.000000e+00 : f32
    %192 = vector.broadcast %cst_68 : f32 to vector<2x128xf32>
    %193 = arith.remf %191, %192 : vector<2x128xf32>
    %cst_69 = arith.constant 0.000000e+00 : f32
    %194 = vector.broadcast %cst_69 : f32 to vector<2x128xf32>
    %195 = arith.cmpf one, %193, %194 : vector<2x128xf32>
    %cst_70 = arith.constant 0.000000e+00 : f32
    %196 = vector.broadcast %cst_70 : f32 to vector<2x128xf32>
    %197 = arith.cmpf olt, %193, %196 : vector<2x128xf32>
    %cst_71 = arith.constant 0.000000e+00 : f32
    %198 = arith.cmpf olt, %cst_68, %cst_71 : f32
    %199 = vector.broadcast %198 : i1 to vector<2x128xi1>
    %200 = vector.broadcast %199 : vector<2x128xi1> to vector<2x128xi1>
    %201 = arith.xori %197, %200 : vector<2x128xi1>
    %202 = arith.andi %201, %195 : vector<2x128xi1>
    %203 = vector.broadcast %cst_68 : f32 to vector<2x128xf32>
    %204 = arith.addf %193, %203 : vector<2x128xf32>
    %205 = arith.select %202, %204, %193 : vector<2x128xi1>, vector<2x128xf32>
    %cst_72 = arith.constant 4.000000e+00 : f32
    %206 = vector.broadcast %cst_72 : f32 to vector<2x128xf32>
    %207 = arith.subf %206, %205 : vector<2x128xf32>
    %208 = arith.minimumf %205, %207 : vector<2x128xf32>
    %cst_73 = arith.constant 0.000000e+00 : f32
    %cst_74 = arith.constant 1.000000e+00 : f32
    %209 = vector.broadcast %cst_73 : f32 to vector<2x128xf32>
    %210 = arith.maximumf %209, %208 : vector<2x128xf32>
    %211 = vector.broadcast %cst_74 : f32 to vector<2x128xf32>
    %212 = arith.minimumf %211, %210 : vector<2x128xf32>
    %213 = arith.mulf %90, %212 : vector<2x128xf32>
    %214 = arith.subf %87, %213 : vector<2x128xf32>
    %cst_75 = arith.constant 0.000000e+00 : f32
    %cst_76 = arith.constant 1.000000e+00 : f32
    %215 = vector.broadcast %cst_75 : f32 to vector<2x128xf32>
    %216 = arith.maximumf %215, %214 : vector<2x128xf32>
    %217 = vector.broadcast %cst_76 : f32 to vector<2x128xf32>
    %218 = arith.minimumf %217, %216 : vector<2x128xf32>
    %c2_77 = arith.constant 2 : index
    %c0_78 = arith.constant 0 : index
    %c0_79 = arith.constant 0 : index
    %c0_80 = arith.constant 0 : index
    %219 = vector.load %arg5[%c2_77, %c0_78, %c0_79, %c0_80] : memref<3x1x2x128xf32, #tpu.memory_space<vmem>>, vector<1x1x2x128xf32>
    %220 = vector.shape_cast %219 : vector<1x1x2x128xf32> to vector<2x128xf32>
    %221 = vector.shape_cast %218 : vector<2x128xf32> to vector<1x1x2x128xf32>
    tpu.vector_store %arg5[%c2_77, %c0_78, %c0_79, %c0_80], %221 {strides = array<i32>} : memref<3x1x2x128xf32, #tpu.memory_space<vmem>>, vector<1x1x2x128xf32>,
    return
  }
  func.func @transform_0(%arg0: i32, %arg1: i32) -> i32 {
    %c0_i32 = arith.constant 0 : i32
    %c0_i32_0 = arith.constant 0 : i32
    return %c0_i32 : i32
  }
  func.func @transform_1(%arg0: i32, %arg1: i32) -> i32 {
    %c0_i32 = arith.constant 0 : i32
    %c0_i32_0 = arith.constant 0 : i32
    return %c0_i32 : i32
  }
  func.func @transform_2(%arg0: i32, %arg1: i32) -> (i32, i32, i32, i32) {
    %c0_i32 = arith.constant 0 : i32
    %c0_i32_0 = arith.constant 0 : i32
    %c0_i32_1 = arith.constant 0 : i32
    return %c0_i32, %arg0, %arg1, %c0_i32_0 : i32, i32, i32, i32
  }
  func.func @transform_3(%arg0: i32, %arg1: i32) -> (i32, i32, i32, i32) {
    %c0_i32 = arith.constant 0 : i32
    %c0_i32_0 = arith.constant 0 : i32
    %c0_i32_1 = arith.constant 0 : i32
    return %c0_i32, %arg0, %arg1, %c0_i32_0 : i32, i32, i32, i32
  }
}

</mosaic_0001>

<bundles_post_ra>
// kernel: tpu_custom_call.1
= control target key start
LH: loop header
LB: loop body
LE: loop exit
PB: predicated region body
PF: predicated region fallthrough
CT: control target
= control target key end

     0   :  { %s1035_s0 = inlined_call_operand.hbm [shape: f32[5], index: 0, kind: input, shape index: {}]   ;;  %s1036_s1 = inlined_call_operand.hbm [shape: f32[2], index: 1, kind: input, shape index: {}]   ;;  %s1037_s2 = inlined_call_operand.hbm [shape: f32[3,2,2,128], index: 2, kind: input, shape index: {}]   ;;  %s1038_s3 = inlined_call_operand.hbm [shape: f32[3,2,2,128], index: 3, kind: output, shape index: {}]  }
   0x1   :  { %1039 = sst [smem:[#allocation14_spill]] %s1035_s0 }
   0x2   :  { %1040 = sst [smem:[#allocation15_spill]] %s1036_s1 }
   0x3   :  { %8 = vsyncpa [#allocation5], 0 }
   0x4   :  { %9 = vsyncpa [#allocation7], 0 }
   0x5   :  { %10 = vsyncpa [#allocation3], 0 }
   0x6   :  { %12 = vsyncpa [#allocation3 + $0x1], 0 }
   0x7   :  { %13 = vsyncpa [#allocation4], 0 }
   0x8   :  { %15 = vsyncpa [#allocation4 + $0x1], 0  ;;  %s852_s12 = smov 0   ;;  %s854_s13 = smov 0  }
   0x9   :  { %s856_s14 = smov 0   ;;  %s858_s15 = smov 0  }
   0xa   :  { %s860_s16 = smov 0   ;;  %s862_s17 = smov 0  }
   0xb LB: > { %s554_s18 = sadd.s32 4294967295, %s821_s17   ;;  %s555_s19 = sadd.s32 4294967294, %s821_s17   ;;  %s821_s17 = sphi %s862_s17, %s21_s17   ;;  %s817_s16 = sphi %s860_s16, %s1054_s16   ;;  %s813_s15 = sphi %s858_s15, %s1053_s15   ;;  %s809_s14 = sphi %s856_s14, %s1052_s14   ;;  %s805_s13 = sphi %s854_s13, %s1051_s13   ;;  %s801_s12 = sphi %s852_s12, %s1050_s12  }
   0xc   : > { %s84_s20 = sadd.s32 1, %s809_s14  ;;  %p91_p0 = scmp.ne.s32.totalorder %s809_s14, %s805_s13 }
   0xd   : > { %p92_p1 = scmp.eq.s32.totalorder %s821_s17, 0  ;;  %p97_p2 = scmp.ne.s32.totalorder %s805_s13, %s801_s12 }
   0xe   : > { %p890_p3 = scmp.eq.s32.totalorder %s554_s18, 0  ;;  %p123_p4 = scmp.eq.s32.totalorder %s554_s18, 1 }
   0xf   : > { %p894_p5 = por %p92_p1, %p91_p0  ;;  %p129_p6 = scmp.eq.s32.totalorder %s555_s19, 1 }
  0x10   : > { %p900_p7 = por %p890_p3, %p97_p2  ;;  %p904_p8 = por %p123_p4, %p91_p0 }
  0x11   : > { %p908_p9 = por %p129_p6, %p97_p2  ;;  %p556_p10 = scmp.ge.s32.totalorder %s821_s17, 1 }
  0x12   : > { %p136_p11 = scmp.lt.s32.totalorder %s821_s17, 3  ;;  %s1046_s0 = sld [smem:[#allocation14_spill]] }
  0x13   : > { %p559_p13 = scmp.ge.s32.totalorder %s821_s17, 2  ;;  %p606_p0 = scmp.lt.s32.totalorder %s821_s17, 2 }
  0x14   : > { %p917_p12 = pnand %p556_p10, %p136_p11  ;;  %s1048_s1 = sld [smem:[#allocation15_spill]] }
  0x15   : > { %p930_p2 = pnand %p606_p0, %p894_p5  ;;  %s823_s7 = smov [#allocation2]  }
  0x16   : > { %p589_p1 = pneg %p917_p12  ;;  %s824_s8 = smov [#allocation6]  }
  0x17   : > { %s33_s9 = sadd.s32 1, %s817_s16  ;;  %s169_s10 = sand.u32 1, %s809_s14  }
  0x18   : > { %s148_s28 = sshll.u32 %s1046_s0, 4  ;;  %p590_p4 = pnand %p589_p1, %p890_p3  ;;  %s149_s28 = int_to_ptr.hbm [resolvable:$true] %s148_s28 }
  0x19   : > { %p35_p6 = scmp.ge.s32.totalorder %s33_s9, 2  ;;  %s575_s11 = smul.u32 6, %s169_s10 }
  0x1a   : > { %s158_s5 = sshll.u32 %s1048_s1, 4  ;;  %s560_s18 = sshll.u32 %s817_s16, 1  ;;  %s159_s5 = int_to_ptr.hbm [resolvable:$true] %s158_s5 }
  0x1b   : > { %592 = dma.hbm_to_smem (!%p590_p4), %s149_s28, 16, %s823_s7, [#allocation5]  }
  0x1c   : > { %595 = dma.hbm_to_smem (!%p590_p4), %s159_s5, 16, %s824_s8, [#allocation7]  }
  0x1d   : > { %s1056_s9 = smov (%p35_p6, %s33_s9), 0  ;;  %s178_s26 = scalar_lea.hbm %s1037_s2, %s560_s18 }
  0x1e   : > { %s79_s27 = ssub.s32 %s817_s16, %s1056_s9  ;;  %s179_s30 = sshll.u32 %s178_s26, 4  ;;  %s180_s30 = int_to_ptr.hbm [resolvable:$true] %s179_s30 }
  0x1f   : > { %p82_p5 = scmp.eq.s32.totalorder %s79_s27, 0  ;;  %s173_s28 = scalar_lea.vmem [#allocation8], %s575_s11 }
  0x20   : > { %s181_s4 = sshll.u32 %s173_s28, 4  ;;  %s170_s7 = scalar_lea.sflag [#allocation3], %s169_s10  ;;  %s182_s4 = int_to_ptr.vmem [resolvable:$true] %s181_s4 }
  0x21   : > { %s949_s5 = scalar_select %p82_p5, %s809_s14, %s84_s20  }
  0x22   : > { %s825_s8 = smov 64   ;;  %s826_s0 = smov 32  }
  0x23   : > { %s827_s1 = smov 2   ;;  %193 = sbr.rel (%p917_p12) target bundleno = 166 (0xa6), region = 32 }
  0x24   : > { %599 = dma.hbm_to_vmem [thread:$0]  (!%p930_p2), %s180_s30, 96, %s182_s4, %s170_s7, %s825_s8, %s826_s0, %s827_s1  }
  0x28   : > { %784 = dma.done.wait (%p890_p3), [#allocation5], 16  }
  0x29   : > { %786 = vsyncadd (%p890_p3), [#allocation5], 4294967280 }
  0x2a   : > { %788 = dma.done.wait (%p890_p3), [#allocation7], 16  }
  0x2b   : > { %790 = vsyncadd (%p890_p3), [#allocation7], 4294967280  ;;  %s964_s20 = sand.u32 1, %s805_s13  }
  0x2c   : > { %s576_s0 = smul.u32 6, %s964_s20  ;;  %s206_s1 = scalar_lea.sflag [#allocation3], %s964_s20 }
  0x2e   : > { %s209_s29 = scalar_lea.vmem [#allocation8], %s576_s0 }
  0x2f   : > { %792 = dma.done.wait (%p900_p7), %s206_s1, 96  }
  0x30   : > { %794 = vsyncadd (%p900_p7), %s206_s1, 4294967200 }
  0x31   : > { %215 = sfence }
  0x32   : > { %s234_s6 = sld [smem:[#allocation2]]  ;;  %v240_v0 = vld [vmem:[%s209_s29] sm:$0x3]  ;;  %v568_v1 = vld [vmem:[%s209_s29 + $0x2] sm:$0x3]  ;;  %v828_v54 = vmov 6.0  }
  0x33   : > { %s564_s21 = sld [smem:[#allocation2 + $0x1]]  ;;  %v569_v2 = vld [vmem:[%s209_s29 + $0x4] sm:$0x3]  ;;  %s572_s19 = sshll.u32 %s813_s15, 1 }
  0x34   : > { %s239_s10 = sld [smem:[#allocation6 + %s813_s15]]  ;;  %s445_s27 = scalar_lea.hbm %s1038_s3, %s572_s19 }
  0x35   : > { %s565_s23 = sld [smem:[#allocation2 + $0x2]]  ;;  %s233_s30 = scalar_lea.vmem [#allocation9], %s576_s0 }
  0x36   : > { %s566_s11 = sld [smem:[#allocation2 + $0x3]]  ;;  %s446_s28 = sshll.u32 %s233_s30, 4  ;;  %s447_s28 = int_to_ptr.vmem [resolvable:$true] %s446_s28 }
  0x37   : > { %s567_s18 = sld [smem:[#allocation2 + $0x4]]  ;;  %s448_s15 = sshll.u32 %s445_s27, 4  ;;  %s449_s15 = int_to_ptr.hbm [resolvable:$true] %s448_s15 }
  0x38   : > { %v245_v3 = vstv %s234_s6  ;;  %s434_s4 = scalar_lea.sflag [#allocation4], %s964_s20  ;;  %s745_s7 = sshra.s32 %s449_s15, 4  ;;  %s746_s7 = int_to_ptr.hbm [resolvable:$true] %s745_s7 }
  0x39   : > { %v246_v4 = vmul.f32 %v245_v3, %v240_v0  ;;  %v249_v5 = vmul.f32 %v568_v1, %v245_v3  ;;  %v252_v6 = vmul.f32 %v569_v2, %v245_v3  ;;  %v255_v10 = vstv %s564_s21  ;;  %s747_s8 = scalar_lea.hbm %s746_s7, 6  ;;  %s751_s29 = scalar_lea.hbm %s1038_s3, 12 }
  0x3a   : > { %v257_v14 = vstv %s239_s10  ;;  %p748_p3 = scmp.ne.s32.totalorder %s746_s7, %s747_s8  ;;  %p752_p11 = scmp.lt.s32.totalorder %s746_s7, %s1038_s3 }
  0x3b   : > { %v247_v7 = vmax.f32 %v246_v4, 0.0  ;;  %v250_v8 = vmax.f32 %v249_v5, 0.0  ;;  %v253_v9 = vmax.f32 %v252_v6, 0.0  ;;  %v276_v30 = vstv %s565_s23  ;;  %p753_p12 = scmp.lt.s32.totalorder %s751_s29, %s747_s8 }
  0x3c   : > { %v274_v32 = vstv %s566_s11  ;;  %p749_p7 = pnand %p748_p3, %p904_p8 }
  0x3d   : > { %v248_v11 = vmin.f32 %v247_v7, 1.0  ;;  %v251_v12 = vmin.f32 %v250_v8, 1.0  ;;  %v254_v13 = vmin.f32 %v253_v9, 1.0  ;;  %p754_p0 = por %p753_p12, %p752_p11 }
  0x3e   : > { %p750_p10 = pneg %p749_p7 }
  0x3f   : > { %v256_v15 = vmul.f32 %v255_v10, %v248_v11  ;;  %v261_v16 = vmul.f32 %v255_v10, %v251_v12  ;;  %v265_v17 = vmul.f32 %v255_v10, %v254_v13 }
  0x40   : > { %p755_p1 = pnand %p754_p0, %p750_p10 }
  0x41   : > { %v258_v18 = vadd.f32 %v257_v14, %v256_v15  ;;  %v262_v19 = vadd.f32 %v261_v16, %v257_v14  ;;  %v266_v20 = vadd.f32 %v265_v17, %v257_v14 }
  0x43   : > { %v259_v21 = vmax.f32 %v258_v18, 0.0  ;;  %v263_v22 = vmax.f32 %v262_v19, 0.0  ;;  %v267_v23 = vmax.f32 %v266_v20, 0.0  ;;  %v333_v19 = vstv %s567_s18 }
  0x45   : > { %v260_v24 = vmin.f32 %v259_v21, 1.0  ;;  %v264_v25 = vmin.f32 %v263_v22, 1.0  ;;  %v268_v26 = vmin.f32 %v267_v23, 1.0 }
  0x47   : > { %v269_v27 = vmul.f32 0.2989, %v260_v24  ;;  %v270_v28 = vmul.f32 0.587, %v264_v25  ;;  %v272_v29 = vmul.f32 0.114, %v268_v26  ;;  %v277_v34 = vmul.f32 %v276_v30, %v260_v24 }
  0x48   : > { %v281_v35 = vmul.f32 %v276_v30, %v264_v25  ;;  %v285_v36 = vmul.f32 %v276_v30, %v268_v26 }
  0x49   : > { %v271_v31 = vadd.f32 %v270_v28, %v269_v27 }
  0x4b   : > { %v273_v33 = vadd.f32 %v272_v29, %v271_v31 }
  0x4d   : > { %v275_v37 = vmul.f32 %v274_v32, %v273_v33 }
  0x4f   : > { %v278_v38 = vadd.f32 %v277_v34, %v275_v37  ;;  %v282_v39 = vadd.f32 %v281_v35, %v275_v37  ;;  %v286_v40 = vadd.f32 %v285_v36, %v275_v37 }
  0x51   : > { %v279_v41 = vmax.f32 %v278_v38, 0.0  ;;  %v283_v42 = vmax.f32 %v282_v39, 0.0  ;;  %v287_v43 = vmax.f32 %v286_v40, 0.0 }
  0x53   : > { %v280_v44 = vmin.f32 %v279_v41, 1.0  ;;  %v284_v45 = vmin.f32 %v283_v42, 1.0  ;;  %v288_v46 = vmin.f32 %v287_v43, 1.0 }
  0x55   : > { %v289_v47 = vmax.f32 %v280_v44, %v284_v45  ;;  %v291_v48 = vmin.f32 %v280_v44, %v284_v45 }
  0x57   : > { %v975_v49 = vmax.f32 %v289_v47, %v288_v46  ;;  %v292_v50 = vmin.f32 %v291_v48, %v288_v46 }
  0x59   : > { %v978_v51 = vsub.f32 %v975_v49, %v292_v50  ;;  %vm294_vm0 = vcmp.eq.f32.partialorder %v975_v49, %v292_v50  ;;  %v311_v62 = vsub.f32 %v975_v49, %v280_v44  ;;  %v313_v0 = vsub.f32 %v975_v49, %v284_v45 }
  0x5a   : > { %v315_v1 = vsub.f32 %v975_v49, %v288_v46  ;;  %vm320_vm5 = vcmp.eq.f32.partialorder %v975_v49, %v284_v45  ;;  %vm321_vm6 = vcmp.ne.f32.partialorder %v975_v49, %v280_v44  ;;  %vm326_vm7 = vcmp.ne.f32.partialorder %v975_v49, %v284_v45 }
  0x5b   : > { %v295_v52 = vsel %vm294_vm0, 1.0, %v978_v51  ;;  %vm317_vm8 = vcmp.eq.f32.partialorder %v975_v49, %v280_v44  ;;  %vm322_vm9 = vmand %vm320_vm5, %vm321_vm6 }
  0x5c   : > { %667 = vrcp.f32 %v295_v52  ;;  %v307_v56 = vand.u32 2147483648, %v295_v52  ;;  %vm301_vm1 = vweird.f32 %v295_v52  ;;  %v305_v58 = vand.u32 2147483647, %v295_v52  ;;  %vm327_vm10 = vmand %vm326_vm7, %vm321_vm6 }
  0x5d   : > { %669 = vrcp.f32 %v828_v54 }
  0x5e   : > { %v308_v61 = vor.u32 1.1754944e-38, %v307_v56  ;;  %vm306_vm4 = vcmp.eq.f32.partialorder %v305_v58, 8.507059e+37 }
  0x62   : > { %v668_v53 = vpop.eup %667 }
  0x63   : > { %v297_v55 = vmul.f32 %v668_v53, %v295_v52  ;;  %vm302_vm2 = vweird.f32 %v668_v53  ;;  %v670_v60 = vpop.eup %669 }
  0x64   : > { %vm303_vm3 = vmor %vm301_vm1, %vm302_vm2  ;;  %v338_v3 = vmul.f32 6.0, %v670_v60  ;;  %vm342_vm11 = vweird.f32 %v670_v60 }
  0x65   : > { %v298_v57 = vsub.f32 1.0, %v297_v55 }
  0x66   : > { %v339_v11 = vsub.f32 1.0, %v338_v3 }
  0x67   : > { %v299_v59 = vmul.f32 %v668_v53, %v298_v57 }
  0x68   : > { %v340_v17 = vmul.f32 %v670_v60, %v339_v11 }
  0x69   : > { %v300_v63 = vadd.f32 %v668_v53, %v299_v59 }
  0x6a   : > { %v341_v21 = vadd.f32 %v670_v60, %v340_v17 }
  0x6b   : > { %v304_v2 = vsel %vm303_vm3, %v668_v53, %v300_v63 }
  0x6c   : > { %v309_v4 = vsel %vm306_vm4, %v308_v61, %v304_v2  ;;  %v343_v26 = vsel %vm342_vm11, %v670_v60, %v341_v21 }
  0x6d   : > { %v312_v5 = vmul.f32 %v311_v62, %v309_v4  ;;  %v314_v6 = vmul.f32 %v313_v0, %v309_v4  ;;  %v316_v7 = vmul.f32 %v315_v1, %v309_v4 }
  0x6f   : > { %v318_v8 = vsub.f32 %v316_v7, %v314_v6  ;;  %v323_v9 = vadd.f32 2.0, %v312_v5  ;;  %v328_v10 = vadd.f32 4.0, %v314_v6 }
  0x71   : > { %v319_v12 = vsel %vm317_vm8, %v318_v8, 0.0  ;;  %v324_v13 = vsub.f32 %v323_v9, %v316_v7  ;;  %v329_v14 = vsub.f32 %v328_v10, %v312_v5 }
  0x73   : > { %v325_v15 = vsel %vm322_vm9, %v324_v13, 0.0  ;;  %v330_v16 = vsel %vm327_vm10, %v329_v14, 0.0 }
  0x74   : > { %v331_v18 = vadd.f32 %v325_v15, %v319_v12 }
  0x76   : > { %v332_v20 = vadd.f32 %v331_v18, %v330_v16 }
  0x78   : > { %v334_v22 = vadd.f32 %v333_v19, %v332_v20 }
  0x7a   : > { %v335_v23 = vadd.f32 5.0, %v334_v22  ;;  %v367_v24 = vadd.f32 3.0, %v334_v22  ;;  %v400_v25 = vadd.f32 1.0, %v334_v22 }
  0x7c   : > { %v336_v27 = vand.u32 2147483647, %v335_v23  ;;  %v368_v28 = vand.u32 2147483647, %v367_v24  ;;  %v401_v29 = vand.u32 2147483647, %v400_v25 }
  0x7d   : > { %v351_v42 = vand.u32 2147483648, %v335_v23  ;;  %v383_v43 = vand.u32 2147483648, %v367_v24  ;;  %v416_v46 = vand.u32 2147483648, %v400_v25 }
  0x7e   : > { %v344_v30 = vmul.f32 %v343_v26, %v336_v27  ;;  %v376_v31 = vmul.f32 %v368_v28, %v343_v26  ;;  %v409_v32 = vmul.f32 %v401_v29, %v343_v26 }
  0x80   : > { %v345_v33 = vfloor.f32 %v344_v30  ;;  %v377_v34 = vfloor.f32 %v376_v31  ;;  %v410_v35 = vfloor.f32 %v409_v32 }
  0x82   : > { %v346_v36 = vmul.f32 6.0, %v345_v33  ;;  %v378_v37 = vmul.f32 6.0, %v377_v34  ;;  %v411_v38 = vmul.f32 6.0, %v410_v35 }
  0x84   : > { %v347_v39 = vsub.f32 %v336_v27, %v346_v36  ;;  %v379_v40 = vsub.f32 %v368_v28, %v378_v37  ;;  %v412_v41 = vsub.f32 %v401_v29, %v411_v38 }
  0x86   : > { %vm348_vm12 = vcmp.eq.f32.partialorder %v347_v39, 6.0  ;;  %vm380_vm13 = vcmp.eq.f32.partialorder %v379_v40, 6.0  ;;  %vm413_vm14 = vcmp.eq.f32.partialorder %v412_v41, 6.0 }
  0x87   : > { %v349_v44 = vsel %vm348_vm12, 0.0, %v347_v39  ;;  %v381_v45 = vsel %vm380_vm13, 0.0, %v379_v40  ;;  %v414_v50 = vsel %vm413_vm14, 0.0, %v412_v41 }
  0x88   : > { %v350_v47 = vand.u32 2147483647, %v349_v44  ;;  %v382_v48 = vand.u32 2147483647, %v381_v45  ;;  %v415_v52 = vand.u32 2147483647, %v414_v50 }
  0x8a   : > { %v352_v53 = vor.u32 %v351_v42, %v350_v47  ;;  %v384_v54 = vor.u32 %v383_v43, %v382_v48  ;;  %v417_v55 = vor.u32 %v416_v46, %v415_v52 }
  0x8c   : > { %vm353_vm15 = vcmp.ne.f32.partialorder %v352_v53, 0.0  ;;  %vm354_vm0 = vcmp.lt.f32.partialorder %v352_v53, 0.0  ;;  %v356_v56 = vadd.f32 6.0, %v352_v53  ;;  %vm385_vm1 = vcmp.ne.f32.partialorder %v384_v54, 0.0 }
  0x8d   : > { %vm355_vm2 = vmand %vm354_vm0, %vm353_vm15  ;;  %vm386_vm3 = vcmp.lt.f32.partialorder %v384_v54, 0.0  ;;  %v388_v57 = vadd.f32 6.0, %v384_v54  ;;  %vm418_vm4 = vcmp.ne.f32.partialorder %v417_v55, 0.0  ;;  %vm419_vm5 = vcmp.lt.f32.partialorder %v417_v55, 0.0 }
  0x8e   : > { %v357_v58 = vsel %vm355_vm2, %v356_v56, %v352_v53  ;;  %vm387_vm6 = vmand %vm386_vm3, %vm385_vm1  ;;  %v421_v59 = vadd.f32 6.0, %v417_v55 }
  0x8f   : > { %v358_v60 = vsub.f32 4.0, %v357_v58  ;;  %v389_v61 = vsel %vm387_vm6, %v388_v57, %v384_v54  ;;  %vm420_vm7 = vmand %vm419_vm5, %vm418_vm4 }
  0x90   : > { %v390_v62 = vsub.f32 4.0, %v389_v61  ;;  %v422_v63 = vsel %vm420_vm7, %v421_v59, %v417_v55 }
  0x91   : > { %v359_v0 = vmin.f32 %v357_v58, %v358_v60  ;;  %v423_v1 = vsub.f32 4.0, %v422_v63 }
  0x92   : > { %v391_v2 = vmin.f32 %v389_v61, %v390_v62 }
  0x93   : > { %v360_v3 = vmax.f32 %v359_v0, 0.0  ;;  %v424_v4 = vmin.f32 %v422_v63, %v423_v1 }
  0x94   : > { %v392_v5 = vmax.f32 %v391_v2, 0.0 }
  0x95   : > { %v361_v6 = vmin.f32 %v360_v3, 1.0  ;;  %v425_v7 = vmax.f32 %v424_v4, 0.0 }
  0x96   : > { %v393_v8 = vmin.f32 %v392_v5, 1.0 }
  0x97   : > { %v362_v9 = vmul.f32 %v361_v6, %v978_v51  ;;  %v426_v10 = vmin.f32 %v425_v7, 1.0 }
  0x98   : > { %v394_v11 = vmul.f32 %v393_v8, %v978_v51 }
  0x99   : > { %v363_v12 = vsub.f32 %v975_v49, %v362_v9  ;;  %v427_v13 = vmul.f32 %v426_v10, %v978_v51 }
  0x9a   : > { %v395_v14 = vsub.f32 %v975_v49, %v394_v11 }
  0x9b   : > { %v364_v15 = vmax.f32 %v363_v12, 0.0  ;;  %v428_v16 = vsub.f32 %v975_v49, %v427_v13 }
  0x9c   : > { %v396_v17 = vmax.f32 %v395_v14, 0.0 }
  0x9d   : > { %v365_v18 = vmin.f32 %v364_v15, 1.0  ;;  %v429_v19 = vmax.f32 %v428_v16, 0.0 }
  0x9e   : > { %v397_v51 = vmin.f32 %v396_v17, 1.0 }
  0x9f   : > { %366 = vst [vmem:[%s233_s30] sm:$0x3] %v365_v18  ;;  %v430_v20 = vmin.f32 %v429_v19, 1.0 }
  0xa0   : > { %570 = vst [vmem:[%s233_s30 + $0x2] sm:$0x3] %v397_v51 }
  0xa1   : > { %571 = vst [vmem:[%s233_s30 + $0x4] sm:$0x3] %v430_v20 }
  0xa2   : > { %758 = shalt.err (!%p755_p1)
}
  0xa3   : > { %s829_s20 = smov 32   ;;  %s830_s10 = smov 64  }
  0xa4   : > { %s831_s23 = smov 2  }
  0xa5   : > { %587 = dma.vmem_to_hbm [thread:$0]  (%p904_p8), %s447_s28, 96, %s449_s15, %s434_s4, %s829_s20, %s830_s10, %s831_s23  }
  0xa6 PF: > { %s463_s11 = sand.u32 1, %s801_s12   ;;  %p601_p2 = pnand %p559_p13, %p908_p9 }
  0xa7   : > { %s464_s18 = scalar_lea.sflag [#allocation4], %s463_s11 }
  0xa8   : > { %p602_p4 = pneg %p601_p2 }
  0xaa   : > { %796 = dma.done.wait (%p602_p4), %s464_s18, 96  }
  0xab   : > { %798 = vsyncadd (%p602_p4), %s464_s18, 4294967200  ;;  %s21_s17 = sadd.s32 1, %s821_s17   ;;  %s1050_s12 = smov %s805_s13 }
  0xac   : > { %p18_p6 = scmp.ge.s32.totalorder %s21_s17, 4   ;;  %s1051_s13 = smov %s809_s14 }
  0xad   : > { %s1052_s14 = smov %s949_s5  ;;  %s1053_s15 = smov %s817_s16 }
  0xae   : > { %s1054_s16 = smov %s1056_s9  ;;  %20 = sbr.rel (!%p18_p6) target bundleno = 11 (0xb), region = 90 }
  0xb3   :  { %470 = vsyncpa [#allocation3], 1 }
  0xb4   :  { %472 = vsyncpa [#allocation3 + $0x1], 1 }
  0xb5   :  { %473 = vsyncpa [#allocation4], 1 }
  0xb6   :  { %475 = vsyncpa [#allocation4 + $0x1], 1 }
  0xb7   :  { %476 = vsyncpa [#allocation5], 1 }
  0xb8   :  { %478 = vsyncpa [#allocation5 + $0x1], 1 }
  0xb9   :  { %479 = vsyncpa [#allocation7], 1 }

</bundles_post_ra>
